<compile_context>
chip_gen: v5e
topology: v5e:2x2
jax: 0.10.0
libtpu: 0.0.40
codegen_flags: <defaults>
</compile_context>

<pallas_src>
import functools

import jax
import jax.numpy as jnp
from jax.experimental import pallas as pl
from jax.experimental.pallas import tpu as pltpu

_MIB = 1024 * 1024


def _round_up(x, m):
    return (x + m - 1) // m * m


def _autopool_kernel(p_ref, h_ref, o_ref, m_sc, num_sc, den_sc,
                     *, n_valid, tn, needs_mask):
    """p_ref: (TB, 1), h_ref: (TB, TN), o_ref: (TB, 1); scratch: (TB, 1) f32."""
    ni = pl.program_id(1)

    @pl.when(ni == 0)
    def _init():
        m_sc[...] = jnp.full_like(m_sc, -jnp.inf)
        num_sc[...] = jnp.zeros_like(num_sc)
        den_sc[...] = jnp.zeros_like(den_sc)

    # f32 logits (matches the PyTorch f32 softmax path even for bf16 h).
    hf = h_ref[...].astype(jnp.float32)                 # (TB, TN)
    p = p_ref[...].astype(jnp.float32)                  # (TB, 1)
    s = p * hf

    if needs_mask:
        # Last N-tile overhangs N: mask out-of-range lanes so they contribute
        # exp(-inf) = 0 to the sums (0-weight for the numerator as well).
        lane = jax.lax.broadcasted_iota(jnp.int32, s.shape, 1)
        valid = (ni * tn + lane) < n_valid
        s = jnp.where(valid, s, -jnp.inf)
        hf = jnp.where(valid, hf, 0.0)

    # Online softmax update; the softmax weights are never materialized.
    m_prev = m_sc[...]
    m_new = jnp.maximum(m_prev, jnp.max(s, axis=-1, keepdims=True))
    scale = jnp.exp(m_prev - m_new)                     # first step: exp(-inf) = 0
    e = jnp.exp(s - m_new)
    den_sc[...] = scale * den_sc[...] + jnp.sum(e, axis=-1, keepdims=True)
    num_sc[...] = scale * num_sc[...] + jnp.sum(hf * e, axis=-1, keepdims=True)
    m_sc[...] = m_new

    @pl.when(ni == pl.num_programs(1) - 1)
    def _finalize():
        # denom >= 1 by construction (max element contributes exp(0) = 1),
        # so the EUP approximate reciprocal is safe here.
        o_ref[...] = (num_sc[...] * pl.reciprocal(den_sc[...], approx=True)
                      ).astype(o_ref.dtype)


def autopool(h, p):
    """h: (B, C, H, W); p: (1, C, 1). Returns (B, C) — matches AutoPool.forward."""
    B, C, H, W = h.shape
    N = H * W
    R = B * C
    itemsize = jnp.dtype(h.dtype).itemsize

    # ---- layout plumbing (contiguous reshapes only; h is never copied/padded) ----
    h_rows = h.reshape(R, N)
    p_rows = jnp.broadcast_to(p.reshape(1, C), (B, C)).reshape(R, 1).astype(jnp.float32)

    # ---- generation-aware VMEM budget (v5e/v6e 128 MiB, v7x 64 MiB/TC) ----
    try:
        vmem_cap = int(pltpu.get_tpu_info().vmem_capacity_bytes)
    except Exception:
        vmem_cap = 64 * _MIB                      # conservative (v7x per-core)
    vmem_limit = max(32 * _MIB, min(3 * vmem_cap // 4, vmem_cap - 16 * _MIB))

    # ---- lane (N) tiling: bound the compute block while N may be huge ----
    max_tn = 2048
    if N <= max_tn:
        tn, n_tiles = N, 1                        # full-extent block (any N allowed)
    else:
        n_tiles = -(-N // max_tn)
        tn = _round_up(-(-N // n_tiles), 128)     # multiple of 128, minimal tail waste
        n_tiles = -(-N // tn)
    needs_mask = (n_tiles * tn != N)

    # ---- row (B*C) tiling ----
    # Per-row VMEM for one (row, tn) strip: double-buffered h + ~4 f32 temporaries.
    bytes_per_row = tn * (2 * itemsize + 16) + 64
    max_rows_by_vmem = max(8, ((vmem_limit // 2) // bytes_per_row) // 8 * 8)
    # Keep f32 temporaries (s, e, hf) <= ~2 MiB each: tb_rows * tn <= 512K elements.
    max_rows_by_temp = max(8, ((512 * 1024) // tn) // 8 * 8)
    row_cap = min(4096, max_rows_by_vmem, max_rows_by_temp)

    r_tiles = -(-R // row_cap)
    # Megacore (v7x): if all rows fit one tile but there is substantial work,
    # split into >= 4 row steps so each TensorCore gets >= 2 pipelined steps.
    # Gated on work size so 1-TC chips only pay it when the overhead is noise.
    if r_tiles < 4 and R >= 32 and R * N * itemsize >= 8 * _MIB:
        r_tiles = 4
    tb_rows = _round_up(-(-R // r_tiles), 8)      # minimal-tail-waste row tile
    if tb_rows >= R:
        tb_rows = R                               # full-extent block (covers R < 8 too)
    r_tiles = -(-R // tb_rows)

    grid = (r_tiles, n_tiles)

    kernel = functools.partial(_autopool_kernel, n_valid=N, tn=tn, needs_mask=needs_mask)

    out = pl.pallas_call(
        kernel,
        out_shape=jax.ShapeDtypeStruct((R, 1), h.dtype),
        grid=grid,
        in_specs=[
            pl.BlockSpec((tb_rows, 1), lambda r, n: (r, 0)),     # per-row p scale
            pl.BlockSpec((tb_rows, tn), lambda r, n: (r, n)),    # h slab
        ],
        out_specs=pl.BlockSpec((tb_rows, 1), lambda r, n: (r, 0)),
        scratch_shapes=[pltpu.VMEM((tb_rows, 1), jnp.float32)] * 3,   # m, num, denom
        compiler_params=pltpu.CompilerParams(
            dimension_semantics=("parallel", "arbitrary"),
            vmem_limit_bytes=int(vmem_limit),
        ),
        cost_estimate=pl.CostEstimate(
            flops=6 * R * N,
            transcendentals=R * N,
            bytes_accessed=R * N * itemsize + R * (4 + itemsize),
        ),
    )(p_rows, h_rows)

    return out.reshape(B, C)


def autopool_ref(h, p):
    """Pure-JAX reference mirroring the PyTorch forward."""
    B, C = h.shape[0], h.shape[1]
    hf = h.reshape(B, C, -1)
    a = jax.nn.softmax(p * hf, axis=-1)
    return jnp.sum(hf * a, axis=-1)


def _check(h, p, atol=5e-3, rtol=5e-3):
    out = jax.block_until_ready(autopool(h, p))
    ref = autopool_ref(h, p)
    assert out.shape == ref.shape
    # Tolerance accounts for the EUP approximate reciprocal in the final
    # normalize (<= ~2^-12 relative); everything else is full f32.
    assert jnp.allclose(out, ref, atol=atol, rtol=rtol), (out, ref)


if __name__ == "__main__":
    key = jax.random.PRNGKey(0)
    k0, k1, k2 = jax.random.split(key, 3)

    # Primary example: B=2, C=4, 16x16 feature map (ncha = C = 4).
    B, C, Hh, Ww = 2, 4, 16, 16
    h = jax.random.normal(k0, (B, C, Hh, Ww), dtype=jnp.float32)
    p_init = 1.0
    p = p_init * jnp.ones((1, C, 1), dtype=jnp.float32)   # AutoPool.__init__ init
    _check(h, p)

    # Small / odd shape: R = 6 (< 8 sublanes), N = 49 (non-128 full-extent block).
    h2 = jax.random.normal(k1, (2, 3, 7, 7), dtype=jnp.float32)
    p2 = 0.5 * jnp.ones((1, 3, 1), dtype=jnp.float32)
    _check(h2, p2)

    # Large-N path: multiple N tiles + tail-lane masking (online softmax).
    h3 = jax.random.normal(k2, (2, 4, 42, 50), dtype=jnp.float32)
    p3 = 1.0 * jnp.ones((1, 4, 1), dtype=jnp.float32)
    _check(h3, p3)

    print("KERNEL_OK")
</pallas_src>

<mosaic_0001>
module attributes {stable_mosaic.version = 11 : i64} {
  func.func @_autopool_kernel(%arg0: i32, %arg1: i32, %arg2: memref<8x1xf32, #tpu.memory_space<vmem>>, %arg3: memref<8x256xf32, #tpu.memory_space<vmem>>, %arg4: memref<8x1xf32, #tpu.memory_space<vmem>>, %arg5: memref<8x1xf32, #tpu.memory_space<vmem>>, %arg6: memref<8x1xf32, #tpu.memory_space<vmem>>, %arg7: memref<8x1xf32, #tpu.memory_space<vmem>>) attributes {dimension_semantics = [#tpu.dimension_semantics<parallel>, #tpu.dimension_semantics<arbitrary>], iteration_bounds = array<i64: 1, 1>, scalar_prefetch = 0 : i64, scratch_operands = 3 : i64, tpu.core_type = #tpu.core_type<tc>, window_params = [{transform_indices = @transform_0, window_bounds = array<i64: 8, 1>}, {transform_indices = @transform_1, window_bounds = array<i64: 8, 256>}, {transform_indices = @transform_2, window_bounds = array<i64: 8, 1>}]} {
    %c0_i32 = arith.constant 0 : i32
    %0 = arith.cmpi eq, %arg1, %c0_i32 : i32
    %1 = arith.extui %0 : i1 to i32
    %c0_i32_0 = arith.constant 0 : i32
    %2 = arith.cmpi ne, %1, %c0_i32_0 : i32
    scf.if %2 {
      %cst_20 = arith.constant 0xFF800000 : f32
      %33 = vector.broadcast %cst_20 : f32 to vector<8x1xf32>
      %c0_21 = arith.constant 0 : index
      %c0_22 = arith.constant 0 : index
      %34 = vector.load %arg5[%c0_21, %c0_22] : memref<8x1xf32, #tpu.memory_space<vmem>>, vector<8x1xf32>
      tpu.vector_store %arg5[%c0_21, %c0_22], %33 {strides = array<i32>} : memref<8x1xf32, #tpu.memory_space<vmem>>, vector<8x1xf32>,
      %cst_23 = arith.constant 0.000000e+00 : f32
      %35 = vector.broadcast %cst_23 : f32 to vector<8x1xf32>
      %c0_24 = arith.constant 0 : index
      %c0_25 = arith.constant 0 : index
      %36 = vector.load %arg6[%c0_24, %c0_25] : memref<8x1xf32, #tpu.memory_space<vmem>>, vector<8x1xf32>
      tpu.vector_store %arg6[%c0_24, %c0_25], %35 {strides = array<i32>} : memref<8x1xf32, #tpu.memory_space<vmem>>, vector<8x1xf32>,
      %cst_26 = arith.constant 0.000000e+00 : f32
      %37 = vector.broadcast %cst_26 : f32 to vector<8x1xf32>
      %c0_27 = arith.constant 0 : index
      %c0_28 = arith.constant 0 : index
      %38 = vector.load %arg7[%c0_27, %c0_28] : memref<8x1xf32, #tpu.memory_space<vmem>>, vector<8x1xf32>
      tpu.vector_store %arg7[%c0_27, %c0_28], %37 {strides = array<i32>} : memref<8x1xf32, #tpu.memory_space<vmem>>, vector<8x1xf32>,
    } else {
    }
    %c0 = arith.constant 0 : index
    %c0_1 = arith.constant 0 : index
    %3 = vector.load %arg3[%c0, %c0_1] : memref<8x256xf32, #tpu.memory_space<vmem>>, vector<8x256xf32>
    %c0_2 = arith.constant 0 : index
    %c0_3 = arith.constant 0 : index
    %4 = vector.load %arg2[%c0_2, %c0_3] : memref<8x1xf32, #tpu.memory_space<vmem>>, vector<8x1xf32>
    %5 = vector.broadcast %4 : vector<8x1xf32> to vector<8x256xf32>
    %6 = arith.mulf %5, %3 : vector<8x256xf32>
    %c0_4 = arith.constant 0 : index
    %c0_5 = arith.constant 0 : index
    %7 = vector.load %arg5[%c0_4, %c0_5] : memref<8x1xf32, #tpu.memory_space<vmem>>, vector<8x1xf32>
    %cst = arith.constant dense<0xFF800000> : vector<8xf32>
    %8 = vector.multi_reduction <maximumf>, %6, %cst [1] : vector<8x256xf32> to vector<8xf32>
    %9 = vector.shape_cast %8 : vector<8xf32> to vector<8x1xf32>
    %10 = arith.maximumf %7, %9 : vector<8x1xf32>
    %11 = arith.subf %7, %10 : vector<8x1xf32>
    %12 = math.exp %11 : vector<8x1xf32>
    %13 = vector.broadcast %10 : vector<8x1xf32> to vector<8x256xf32>
    %14 = arith.subf %6, %13 : vector<8x256xf32>
    %15 = math.exp %14 : vector<8x256xf32>
    %c0_6 = arith.constant 0 : index
    %c0_7 = arith.constant 0 : index
    %16 = vector.load %arg7[%c0_6, %c0_7] : memref<8x1xf32, #tpu.memory_space<vmem>>, vector<8x1xf32>
    %17 = arith.mulf %12, %16 : vector<8x1xf32>
    %cst_8 = arith.constant dense<0.000000e+00> : vector<8xf32>
    %18 = vector.multi_reduction <add>, %15, %cst_8 [1] : vector<8x256xf32> to vector<8xf32>
    %19 = vector.shape_cast %18 : vector<8xf32> to vector<8x1xf32>
    %20 = arith.addf %17, %19 : vector<8x1xf32>
    %c0_9 = arith.constant 0 : index
    %c0_10 = arith.constant 0 : index
    %21 = vector.load %arg7[%c0_9, %c0_10] : memref<8x1xf32, #tpu.memory_space<vmem>>, vector<8x1xf32>
    tpu.vector_store %arg7[%c0_9, %c0_10], %20 {strides = array<i32>} : memref<8x1xf32, #tpu.memory_space<vmem>>, vector<8x1xf32>,
    %c0_11 = arith.constant 0 : index
    %c0_12 = arith.constant 0 : index
    %22 = vector.load %arg6[%c0_11, %c0_12] : memref<8x1xf32, #tpu.memory_space<vmem>>, vector<8x1xf32>
    %23 = arith.mulf %12, %22 : vector<8x1xf32>
    %24 = arith.mulf %3, %15 : vector<8x256xf32>
    %cst_13 = arith.constant dense<0.000000e+00> : vector<8xf32>
    %25 = vector.multi_reduction <add>, %24, %cst_13 [1] : vector<8x256xf32> to vector<8xf32>
    %26 = vector.shape_cast %25 : vector<8xf32> to vector<8x1xf32>
    %27 = arith.addf %23, %26 : vector<8x1xf32>
    %c0_14 = arith.constant 0 : index
    %c0_15 = arith.constant 0 : index
    %28 = vector.load %arg6[%c0_14, %c0_15] : memref<8x1xf32, #tpu.memory_space<vmem>>, vector<8x1xf32>
    tpu.vector_store %arg6[%c0_14, %c0_15], %27 {strides = array<i32>} : memref<8x1xf32, #tpu.memory_space<vmem>>, vector<8x1xf32>,
    %c0_16 = arith.constant 0 : index
    %c0_17 = arith.constant 0 : index
    %29 = vector.load %arg5[%c0_16, %c0_17] : memref<8x1xf32, #tpu.memory_space<vmem>>, vector<8x1xf32>
    tpu.vector_store %arg5[%c0_16, %c0_17], %10 {strides = array<i32>} : memref<8x1xf32, #tpu.memory_space<vmem>>, vector<8x1xf32>,
    %c0_i32_18 = arith.constant 0 : i32
    %30 = arith.cmpi eq, %arg1, %c0_i32_18 : i32
    %31 = arith.extui %30 : i1 to i32
    %c0_i32_19 = arith.constant 0 : i32
    %32 = arith.cmpi ne, %31, %c0_i32_19 : i32
    scf.if %32 {
      %c0_20 = arith.constant 0 : index
      %c0_21 = arith.constant 0 : index
      %33 = vector.load %arg6[%c0_20, %c0_21] : memref<8x1xf32, #tpu.memory_space<vmem>>, vector<8x1xf32>
      %c0_22 = arith.constant 0 : index
      %c0_23 = arith.constant 0 : index
      %34 = vector.load %arg7[%c0_22, %c0_23] : memref<8x1xf32, #tpu.memory_space<vmem>>, vector<8x1xf32>
      %35 = tpu.reciprocal %34 {approx = true} : vector<8x1xf32> -> vector<8x1xf32>
      %36 = arith.mulf %33, %35 : vector<8x1xf32>
      %c0_24 = arith.constant 0 : index
      %c0_25 = arith.constant 0 : index
      %37 = vector.load %arg4[%c0_24, %c0_25] : memref<8x1xf32, #tpu.memory_space<vmem>>, vector<8x1xf32>
      tpu.vector_store %arg4[%c0_24, %c0_25], %36 {strides = array<i32>} : memref<8x1xf32, #tpu.memory_space<vmem>>, vector<8x1xf32>,
    } else {
    }
    return
  }
  func.func @transform_0(%arg0: i32, %arg1: i32) -> (i32, i32) {
    %c0_i32 = arith.constant 0 : i32
    %c0_i32_0 = arith.constant 0 : i32
    return %arg0, %c0_i32 : i32, i32
  }
  func.func @transform_1(%arg0: i32, %arg1: i32) -> (i32, i32) {
    %c0_i32 = arith.constant 0 : i32
    return %arg0, %arg1 : i32, i32
  }
  func.func @transform_2(%arg0: i32, %arg1: i32) -> (i32, i32) {
    %c0_i32 = arith.constant 0 : i32
    %c0_i32_0 = arith.constant 0 : i32
    return %arg0, %c0_i32 : i32, i32
  }
}

</mosaic_0001>

<bundles_post_ra>
// kernel: tpu_custom_call.1
= control target key start
LH: loop header
LB: loop body
LE: loop exit
PB: predicated region body
PF: predicated region fallthrough
CT: control target
= control target key end

     0   :  { %7 = vsyncpa [#allocation6], 0  ;;  %s133_s12 = smov [#allocation5]   ;;  %s168_s0 = inlined_call_operand.vmem [shape: f32[8,1], index: 0, kind: input, shape index: {}]   ;;  %s169_s1 = inlined_call_operand.hbm [shape: f32[8,256], index: 1, kind: input, shape index: {}]   ;;  %s170_s2 = inlined_call_operand.vmem [shape: f32[8,1], index: 2, kind: output, shape index: {}]  }
   0x1   :  { %s15_s11 = sshll.u32 %s169_s1, 4  ;;  %s17_s13 = sshll.u32 %s133_s12, 4  ;;  %s16_s11 = int_to_ptr.hbm [resolvable:$true] %s15_s11  ;;  %s18_s13 = int_to_ptr.vmem [resolvable:$true] %s17_s13 }
   0x2   :  { %20 = dma.hbm_to_vmem [thread:$0]  %s16_s11, 256, %s18_s13, [#allocation6]  }
   0x3   :  { %131 = dma.done.wait [#allocation6], 256  }
   0x4   :  { %132 = vsyncadd [#allocation6], 4294967040  ;;  %v134_v0 = vmov 0   ;;  %v35_v1 = vld [vmem:[%s168_s0] sm:$0xff]  ;;  %vm29_vm0 = vcmask 7168   ;;  %v135_v2 = vmov -inf  }
   0x5   :  { %97 = vset.pattern.permute.xlu0 %v134_v0  ;;  %98 = vset.pattern.permute.xlu1 %v134_v0  ;;  %30 = vst.msk [vmem:[#allocation2] sm:$0xff] %vm29_vm0, %v135_v2  ;;  %v33_v3 = vld [vmem:[#allocation5] sm:$0xff]  ;;  %v34_v4 = vld [vmem:[#allocation5 + $0x8] sm:$0xff]  ;;  %v136_v9 = vmov 0.0  }
   0x6   :  { %38 = vperm.xlu0 %97, %v35_v1   ;;  %32 = vst.msk [vmem:[#allocation4] sm:$0xff] %vm29_vm0, %v136_v9 }
   0x7   :  { %31 = vst.msk [vmem:[#allocation3] sm:$0xff] %vm29_vm0, %v136_v9 }
   0xc   :  { %v43_v10 = vld [vmem:[#allocation2] sm:$0xff] }
   0xd   :  { %v62_v27 = vld [vmem:[#allocation4] sm:$0xff] }
   0xe   :  { %v70_v28 = vld [vmem:[#allocation3] sm:$0xff] }
  0x78   :  { %v39_v5 = vpop.permute.xlu0 %38 }
  0x79   :  { %v41_v6 = vmul.f32 %v39_v5, %v33_v3  ;;  %v42_v7 = vmul.f32 %v39_v5, %v34_v4 }
  0x7b   :  { %v44_v8 = vmax.f32 %v41_v6, %v42_v7 }
  0x7d   :  { %45 = vmax.xlane.f32.xlu0 %v44_v8 }
  0xf0   :  { %v46_v11 = vpop.xlane.xlu0 %45 }
  0xf1   :  { %v47_v12 = vmax.f32 %v43_v10, %v46_v11 }
  0xf3   :  { %v48_v13 = vsub.f32 %v43_v10, %v47_v12  ;;  %79 = vst.msk [vmem:[#allocation2] sm:$0xff] %vm29_vm0, %v47_v12  ;;  %53 = vperm.xlu1 %98, %v47_v12  }
  0xf5   :  { %v49_v25 = vmul.f32 1.442695, %v48_v13 }
 0x165   :  { %v54_v14 = vpop.permute.xlu1 %53 }
 0x166   :  { %v56_v15 = vsub.f32 %v41_v6, %v54_v14  ;;  %v57_v16 = vsub.f32 %v42_v7, %v54_v14 }
 0x168   :  { %v58_v17 = vmul.f32 1.442695, %v56_v15  ;;  %v60_v18 = vmul.f32 1.442695, %v57_v16 }
 0x16a   :  { %99 = vpow2.f32 %v58_v17 }
 0x16b   :  { %101 = vpow2.f32 %v60_v18 }
 0x16c   :  { %103 = vpow2.f32 %v49_v25 }
 0x170   :  { %v100_v19 = vpop.eup %99 }
 0x171   :  { %v102_v20 = vpop.eup %101  ;;  %v72_v21 = vmul.f32 %v100_v19, %v33_v3 }
 0x172   :  { %v64_v22 = vadd.f32 %v102_v20, %v100_v19  ;;  %v73_v23 = vmul.f32 %v102_v20, %v34_v4  ;;  %v104_v26 = vpop.eup %103 }
 0x173   :  { %v63_v29 = vmul.f32 %v104_v26, %v62_v27  ;;  %v71_v32 = vmul.f32 %v104_v26, %v70_v28 }
 0x174   :  { %65 = vadd.xlane.f32.xlu1 %v64_v22  ;;  %v74_v24 = vadd.f32 %v73_v23, %v72_v21 }
 0x176   :  { %75 = vadd.xlane.f32.xlu2 %v74_v24 }
 0x1e7   :  { %v66_v30 = vpop.xlane.xlu1 %65 }
 0x1e8   :  { %v67_v31 = vadd.f32 %v66_v30, %v63_v29 }
 0x1e9   :  { %v76_v33 = vpop.xlane.xlu2 %75 }
 0x1ea   :  { %69 = vst.msk [vmem:[#allocation4] sm:$0xff] %vm29_vm0, %v67_v31  ;;  %v77_v34 = vadd.f32 %v76_v33, %v71_v32 }
 0x1ec   :  { %78 = vst.msk [vmem:[#allocation3] sm:$0xff] %vm29_vm0, %v77_v34 }
 0x1f1   :  { %v84_v35 = vld [vmem:[#allocation4] sm:$0xff] }
 0x1f2   :  { %105 = vrcp.f32 %v84_v35 }
 0x1f3   :  { %v83_v37 = vld [vmem:[#allocation3] sm:$0xff] }
 0x1f8   :  { %v106_v36 = vpop.eup %105 }
 0x1f9   :  { %v86_v38 = vmul.f32 %v106_v36, %v83_v37 }
 0x1fb   :  { %87 = vst.msk [vmem:[%s170_s2] sm:$0xff] %vm29_vm0, %v86_v38 }
 0x1fc   :  { %92 = vsyncpa [#allocation6], 1 }

</bundles_post_ra>
